<compile_context>
chip_gen: v7x
topology: tpu7x:2x2x1
jax: 0.10.0
libtpu: 0.0.40
codegen_flags: <defaults>
</compile_context>

<pallas_src>
import math
import functools

import jax
import jax.numpy as jnp
import numpy as np
from jax.experimental import pallas as pl
from jax.experimental.pallas import tpu as pltpu


def _mab_kernel(q_ref, k_ref,
                wq_ref, bq_ref,
                wkv_ref, bkv_ref,
                wo_ref, bo_ref,
                out_ref,
                *, num_heads: int, dim_V: int, bt: int):
    H = num_heads
    ds = dim_V // H
    _, Nq, dim_Q = q_ref.shape
    _, Nk, dim_K = k_ref.shape
    f32, bf16 = jnp.float32, jnp.bfloat16

    # Inputs are f32 blocks; cast to bf16 in VMEM and flatten so projections see M = bt*N rows.
    Qm = q_ref[...].astype(bf16).reshape(bt * Nq, dim_Q)
    Km = k_ref[...].astype(bf16).reshape(bt * Nk, dim_K)

    # Projections: bf16 operands, f32 accumulation. 1/sqrt(ds) already folded into wkv/bkv (K half).
    q = jnp.dot(Qm, wq_ref[...], preferred_element_type=f32) + bq_ref[...]      # (bt*Nq, dV)  f32
    kv = jnp.dot(Km, wkv_ref[...], preferred_element_type=f32) + bkv_ref[...]   # (bt*Nk, 2dV) f32

    def split_heads(x_bf, n, off):
        # (bt*n, features) -> (H*bt, n, ds), head-major; slices + concat (robust Mosaic constructs).
        parts = [x_bf[:, off + h * ds: off + (h + 1) * ds].reshape(1, bt, n, ds)
                 for h in range(H)]
        return jnp.concatenate(parts, axis=0).reshape(H * bt, n, ds)

    q_bf = q.astype(bf16)          # bf16 copy only feeds the scores matmul
    kv_bf = kv.astype(bf16)
    qh = split_heads(q_bf, Nq, 0)          # (H*bt, Nq, ds)
    kh = split_heads(kv_bf, Nk, 0)         # pre-scaled by 1/sqrt(ds)
    vh = split_heads(kv_bf, Nk, dim_V)

    # Batched attention over all (head, batch) pairs: one MXU push per stage.
    scores = jnp.einsum('bqd,bkd->bqk', qh, kh,
                        preferred_element_type=f32)               # (H*bt, Nq, Nk) f32
    m = jnp.max(scores, axis=-1, keepdims=True)
    e = jnp.exp(scores - m)                                       # f32 (portable EUP path)
    row_sum = jnp.sum(e, axis=-1, keepdims=True)
    # Deferred normalisation: matmul unnormalised probabilities, rescale the (much smaller) ctx.
    ctx = jnp.einsum('bqk,bkd->bqd', e.astype(bf16), vh,
                     preferred_element_type=f32)                  # (H*bt, Nq, ds) f32
    ctx = ctx * pl.reciprocal(row_sum, approx=True)

    # Merge heads back into the feature dim; residual uses the already-merged q (only ctx is
    # relaid out).
    ctx4 = ctx.reshape(H, bt, Nq, ds)
    ctx_m = jnp.concatenate([ctx4[h].reshape(bt * Nq, ds) for h in range(H)], axis=-1)
    o = q + ctx_m                                                 # (bt*Nq, dV) f32

    # Output projection + ReLU + residual.
    proj = jnp.dot(o.astype(bf16), wo_ref[...], preferred_element_type=f32) + bo_ref[...]
    out = o + jnp.maximum(proj, 0.0)

    out_ref[...] = out.reshape(bt, Nq, dim_V).astype(out_ref.dtype)


def _vmem_bytes_estimate(bt, Nq, Nk, dim_Q, dim_K, dim_V, H):
    """Rough per-grid-step VMEM footprint (live temporaries + double-buffered blocks)."""
    F, B16 = 4, 2
    scores = bt * H * Nq * Nk * (F + F + B16)                # scores f32, e f32, e bf16 copy
    proj = bt * (Nq * dim_V + Nk * 2 * dim_V) * (F + B16)    # q/kv f32 + bf16 copies
    heads = bt * (Nq + 2 * Nk) * dim_V * B16                 # qh/kh/vh bf16
    ctx = 3 * bt * Nq * dim_V * F                            # ctx, merged ctx, o
    io = 2 * bt * (Nq * dim_Q + Nk * dim_K) * F              # double-buffered Q/K input blocks
    outb = 2 * bt * Nq * dim_V * F                           # double-buffered output block
    w = 2 * (dim_Q * dim_V + dim_K * 2 * dim_V + dim_V * dim_V) * B16 + 2 * 4 * dim_V * F
    return scores + proj + heads + ctx + io + outb + w


_VMEM_BUDGET = 24 * 1024 * 1024   # conservative: fits under default scoped VMEM on all chips


def mab_forward(Q, K, params, *, num_heads: int, block_batch=None):
    """Pallas MAB forward. Q:(B,Nq,dim_Q) K:(B,Nk,dim_K) -> (B,Nq,dim_V) float32."""
    B, Nq, dim_Q = Q.shape
    Bk, Nk, dim_K = K.shape
    assert Bk == B, "Q and K must share the batch dimension"
    dim_V = params["wq"].shape[1]
    assert dim_V % num_heads == 0, "dim_V must be divisible by num_heads"
    ds = dim_V // num_heads
    scale = 1.0 / math.sqrt(ds)

    f32, bf16 = jnp.float32, jnp.bfloat16

    # Fuse K/V projections and fold the 1/sqrt(ds) score scale into the K half.
    wkv = jnp.concatenate([params["wk"] * scale, params["wv"]], axis=1).astype(bf16)  # (dim_K,2dV)
    bkv = jnp.concatenate([params["bk"] * scale, params["bv"]], axis=1).astype(f32)   # (1,2dV)
    wq, wo = params["wq"].astype(bf16), params["wo"].astype(bf16)
    bq, bo = params["bq"].astype(f32), params["bo"].astype(f32)
    Qf, Kf = Q.astype(f32), K.astype(f32)    # activations stay f32; bf16 cast happens in-kernel

    if block_batch is None:
        # Feed the MXU ~512 rows per projection (v6e/v7x MXUs are 256 wide), but:
        #  * keep >= 2 grid steps so the "parallel" axis can use both v7x TensorCores,
        #  * keep the estimated per-step VMEM footprint under budget.
        target_rows = 512
        bt = max(1, min(B, target_rows // max(Nq, Nk, 1)))
        bt = min(bt, max(1, B // 2))

        def fits(b):
            return _vmem_bytes_estimate(b, Nq, Nk, dim_Q, dim_K, dim_V, num_heads) <= _VMEM_BUDGET

        while bt > 1 and (B % bt or not fits(bt)):
            bt -= 1
    else:
        bt = block_batch
        assert B % bt == 0

    est = _vmem_bytes_estimate(bt, Nq, Nk, dim_Q, dim_K, dim_V, num_heads)
    vmem_limit = int(min(64 * 1024 * 1024, max(32 * 1024 * 1024, 2 * est)))

    kernel = functools.partial(_mab_kernel, num_heads=num_heads, dim_V=dim_V, bt=bt)

    # NOTE: weights have constant index_maps; Pallas still double-buffers them. pl.Buffered(1)
    # would reclaim that VMEM but is skipped here for lowering robustness (accounted in estimate).
    grid_spec = pltpu.PrefetchScalarGridSpec(
        num_scalar_prefetch=0,
        grid=(B // bt,),
        in_specs=[
            pl.BlockSpec((bt, Nq, dim_Q), lambda b: (b, 0, 0)),     # Q  (f32)
            pl.BlockSpec((bt, Nk, dim_K), lambda b: (b, 0, 0)),     # K  (f32)
            pl.BlockSpec((dim_Q, dim_V), lambda b: (0, 0)),         # wq (bf16)
            pl.BlockSpec((1, dim_V), lambda b: (0, 0)),             # bq (f32)
            pl.BlockSpec((dim_K, 2 * dim_V), lambda b: (0, 0)),     # wkv (bf16, scale folded)
            pl.BlockSpec((1, 2 * dim_V), lambda b: (0, 0)),         # bkv (f32)
            pl.BlockSpec((dim_V, dim_V), lambda b: (0, 0)),         # wo (bf16)
            pl.BlockSpec((1, dim_V), lambda b: (0, 0)),             # bo (f32)
        ],
        out_specs=pl.BlockSpec((bt, Nq, dim_V), lambda b: (b, 0, 0)),
    )

    return pl.pallas_call(
        kernel,
        out_shape=jax.ShapeDtypeStruct((B, Nq, dim_V), f32),
        grid_spec=grid_spec,
        compiler_params=pltpu.CompilerParams(
            dimension_semantics=("parallel",),
            vmem_limit_bytes=vmem_limit),
    )(Qf, Kf, wq, bq, wkv, bkv, wo, bo)


def mab_reference(Q, K, params, *, num_heads: int):
    """Pure-JAX f32 reference mirroring the PyTorch forward (mask=None, ln=False)."""
    dim_V = params["wq"].shape[1]
    ds = dim_V // num_heads
    B = Q.shape[0]

    q = Q @ params["wq"] + params["bq"][0]
    k = K @ params["wk"] + params["bk"][0]
    v = K @ params["wv"] + params["bv"][0]

    def split_heads(x):
        b, n, _ = x.shape
        return x.reshape(b, n, num_heads, ds).transpose(0, 2, 1, 3).reshape(b * num_heads, n, ds)

    q_, k_, v_ = split_heads(q), split_heads(k), split_heads(v)
    scores = jnp.einsum("bqd,bkd->bqk", q_, k_) / math.sqrt(ds)
    attn = jax.nn.softmax(scores, axis=2)
    o = q_ + jnp.einsum("bqk,bkd->bqd", attn, v_)
    o = o.reshape(B, num_heads, -1, ds).transpose(0, 2, 1, 3).reshape(B, -1, dim_V)
    o = o + jax.nn.relu(o @ params["wo"] + params["bo"][0])
    return o


def init_params(key, dim_Q, dim_K, dim_V):
    ks = jax.random.split(key, 8)

    def lin(kw, kb, fan_in, fan_out):
        bound = 1.0 / math.sqrt(fan_in)
        w = jax.random.uniform(kw, (fan_in, fan_out), jnp.float32, -bound, bound)
        b = jax.random.uniform(kb, (1, fan_out), jnp.float32, -bound, bound)
        return w, b

    wq, bq = lin(ks[0], ks[1], dim_Q, dim_V)
    wk, bk = lin(ks[2], ks[3], dim_K, dim_V)
    wv, bv = lin(ks[4], ks[5], dim_K, dim_V)
    wo, bo = lin(ks[6], ks[7], dim_V, dim_V)
    return dict(wq=wq, bq=bq, wk=wk, bk=bk, wv=wv, bv=bv, wo=wo, bo=bo)


if __name__ == "__main__":
    B, Nq, Nk = 2, 8, 8
    dim_Q, dim_K, dim_V, num_heads = 32, 32, 32, 4

    root = jax.random.PRNGKey(0)
    k_q, k_k, k_p = jax.random.split(root, 3)
    Q = jax.random.normal(k_q, (B, Nq, dim_Q), jnp.float32)
    K = jax.random.normal(k_k, (B, Nk, dim_K), jnp.float32)
    params = init_params(k_p, dim_Q, dim_K, dim_V)

    out = mab_forward(Q, K, params, num_heads=num_heads)
    out = jax.block_until_ready(out)

    ref = jax.block_until_ready(mab_reference(Q, K, params, num_heads=num_heads))
    # Tolerance reflects bf16 matmul operands, bf16 attention probabilities, and the
    # approximate-reciprocal softmax rescale vs. the all-f32 reference.
    np.testing.assert_allclose(np.asarray(out), np.asarray(ref), rtol=5e-2, atol=5e-2)

    print("KERNEL_OK")
</pallas_src>

<mosaic_0001>
module attributes {stable_mosaic.version = 11 : i64} {
  func.func @_mab_kernel(%arg0: i32, %arg1: memref<1x8x32xf32, #tpu.memory_space<vmem>>, %arg2: memref<1x8x32xf32, #tpu.memory_space<vmem>>, %arg3: memref<32x32xbf16, #tpu.memory_space<vmem>>, %arg4: memref<1x32xf32, #tpu.memory_space<vmem>>, %arg5: memref<32x64xbf16, #tpu.memory_space<vmem>>, %arg6: memref<1x64xf32, #tpu.memory_space<vmem>>, %arg7: memref<32x32xbf16, #tpu.memory_space<vmem>>, %arg8: memref<1x32xf32, #tpu.memory_space<vmem>>, %arg9: memref<1x8x32xf32, #tpu.memory_space<vmem>>) attributes {dimension_semantics = [#tpu.dimension_semantics<parallel>], iteration_bounds = array<i64: 2>, scalar_prefetch = 0 : i64, scratch_operands = 0 : i64, tpu.core_type = #tpu.core_type<tc>, window_params = [{transform_indices = @transform_0, window_bounds = array<i64: 1, 8, 32>}, {transform_indices = @transform_1, window_bounds = array<i64: 1, 8, 32>}, {pipeline_mode = #tpu.pipeline_mode<synchronous>, transform_indices = @transform_2, window_bounds = array<i64: 32, 32>}, {pipeline_mode = #tpu.pipeline_mode<synchronous>, transform_indices = @transform_3, window_bounds = array<i64: 1, 32>}, {pipeline_mode = #tpu.pipeline_mode<synchronous>, transform_indices = @transform_4, window_bounds = array<i64: 32, 64>}, {pipeline_mode = #tpu.pipeline_mode<synchronous>, transform_indices = @transform_5, window_bounds = array<i64: 1, 64>}, {pipeline_mode = #tpu.pipeline_mode<synchronous>, transform_indices = @transform_6, window_bounds = array<i64: 32, 32>}, {pipeline_mode = #tpu.pipeline_mode<synchronous>, transform_indices = @transform_7, window_bounds = array<i64: 1, 32>}, {transform_indices = @transform_8, window_bounds = array<i64: 1, 8, 32>}]} {
    %c0 = arith.constant 0 : index
    %c0_0 = arith.constant 0 : index
    %c0_1 = arith.constant 0 : index
    %0 = vector.load %arg1[%c0, %c0_0, %c0_1] : memref<1x8x32xf32, #tpu.memory_space<vmem>>, vector<1x8x32xf32>
    %1 = arith.truncf %0 : vector<1x8x32xf32> to vector<1x8x32xbf16>
    %2 = vector.shape_cast %1 : vector<1x8x32xbf16> to vector<8x32xbf16>
    %c0_2 = arith.constant 0 : index
    %c0_3 = arith.constant 0 : index
    %c0_4 = arith.constant 0 : index
    %3 = vector.load %arg2[%c0_2, %c0_3, %c0_4] : memref<1x8x32xf32, #tpu.memory_space<vmem>>, vector<1x8x32xf32>
    %4 = arith.truncf %3 : vector<1x8x32xf32> to vector<1x8x32xbf16>
    %5 = vector.shape_cast %4 : vector<1x8x32xbf16> to vector<8x32xbf16>
    %c0_5 = arith.constant 0 : index
    %c0_6 = arith.constant 0 : index
    %6 = vector.load %arg3[%c0_5, %c0_6] : memref<32x32xbf16, #tpu.memory_space<vmem>>, vector<32x32xbf16>
    %cst = arith.constant dense<0.000000e+00> : vector<8x32xf32>
    %7 = tpu.matmul %2, %6, %cst {dimension_numbers = #tpu.dot_dimension_numbers<[1], [0], [0], [1], [0, 0, 1, 1], [], []>} : vector<8x32xbf16>, vector<32x32xbf16>, vector<8x32xf32> -> vector<8x32xf32>
    %c0_7 = arith.constant 0 : index
    %c0_8 = arith.constant 0 : index
    %8 = vector.load %arg4[%c0_7, %c0_8] : memref<1x32xf32, #tpu.memory_space<vmem>>, vector<1x32xf32>
    %9 = vector.broadcast %8 : vector<1x32xf32> to vector<8x32xf32>
    %10 = arith.addf %7, %9 : vector<8x32xf32>
    %c0_9 = arith.constant 0 : index
    %c0_10 = arith.constant 0 : index
    %11 = vector.load %arg5[%c0_9, %c0_10] : memref<32x64xbf16, #tpu.memory_space<vmem>>, vector<32x64xbf16>
    %cst_11 = arith.constant dense<0.000000e+00> : vector<8x64xf32>
    %12 = tpu.matmul %5, %11, %cst_11 {dimension_numbers = #tpu.dot_dimension_numbers<[1], [0], [0], [1], [0, 0, 1, 1], [], []>} : vector<8x32xbf16>, vector<32x64xbf16>, vector<8x64xf32> -> vector<8x64xf32>
    %c0_12 = arith.constant 0 : index
    %c0_13 = arith.constant 0 : index
    %13 = vector.load %arg6[%c0_12, %c0_13] : memref<1x64xf32, #tpu.memory_space<vmem>>, vector<1x64xf32>
    %14 = vector.broadcast %13 : vector<1x64xf32> to vector<8x64xf32>
    %15 = arith.addf %12, %14 : vector<8x64xf32>
    %16 = arith.truncf %10 : vector<8x32xf32> to vector<8x32xbf16>
    %17 = arith.truncf %15 : vector<8x64xf32> to vector<8x64xbf16>
    %18 = vector.extract_strided_slice %16 {offsets = [0, 0], sizes = [8, 8], strides = [1, 1]} : vector<8x32xbf16> to vector<8x8xbf16>
    %19 = vector.shape_cast %18 : vector<8x8xbf16> to vector<1x1x8x8xbf16>
    %20 = vector.extract_strided_slice %16 {offsets = [0, 8], sizes = [8, 8], strides = [1, 1]} : vector<8x32xbf16> to vector<8x8xbf16>
    %21 = vector.shape_cast %20 : vector<8x8xbf16> to vector<1x1x8x8xbf16>
    %22 = vector.extract_strided_slice %16 {offsets = [0, 16], sizes = [8, 8], strides = [1, 1]} : vector<8x32xbf16> to vector<8x8xbf16>
    %23 = vector.shape_cast %22 : vector<8x8xbf16> to vector<1x1x8x8xbf16>
    %24 = vector.extract_strided_slice %16 {offsets = [0, 24], sizes = [8, 8], strides = [1, 1]} : vector<8x32xbf16> to vector<8x8xbf16>
    %25 = vector.shape_cast %24 : vector<8x8xbf16> to vector<1x1x8x8xbf16>
    %26 = tpu.concatenate %19, %21, %23, %25 in 0 : vector<1x1x8x8xbf16>, vector<1x1x8x8xbf16>, vector<1x1x8x8xbf16>, vector<1x1x8x8xbf16> -> vector<4x1x8x8xbf16>
    %27 = vector.shape_cast %26 : vector<4x1x8x8xbf16> to vector<4x8x8xbf16>
    %28 = vector.extract_strided_slice %17 {offsets = [0, 0], sizes = [8, 8], strides = [1, 1]} : vector<8x64xbf16> to vector<8x8xbf16>
    %29 = vector.shape_cast %28 : vector<8x8xbf16> to vector<1x1x8x8xbf16>
    %30 = vector.extract_strided_slice %17 {offsets = [0, 8], sizes = [8, 8], strides = [1, 1]} : vector<8x64xbf16> to vector<8x8xbf16>
    %31 = vector.shape_cast %30 : vector<8x8xbf16> to vector<1x1x8x8xbf16>
    %32 = vector.extract_strided_slice %17 {offsets = [0, 16], sizes = [8, 8], strides = [1, 1]} : vector<8x64xbf16> to vector<8x8xbf16>
    %33 = vector.shape_cast %32 : vector<8x8xbf16> to vector<1x1x8x8xbf16>
    %34 = vector.extract_strided_slice %17 {offsets = [0, 24], sizes = [8, 8], strides = [1, 1]} : vector<8x64xbf16> to vector<8x8xbf16>
    %35 = vector.shape_cast %34 : vector<8x8xbf16> to vector<1x1x8x8xbf16>
    %36 = tpu.concatenate %29, %31, %33, %35 in 0 : vector<1x1x8x8xbf16>, vector<1x1x8x8xbf16>, vector<1x1x8x8xbf16>, vector<1x1x8x8xbf16> -> vector<4x1x8x8xbf16>
    %37 = vector.shape_cast %36 : vector<4x1x8x8xbf16> to vector<4x8x8xbf16>
    %38 = vector.extract_strided_slice %17 {offsets = [0, 32], sizes = [8, 8], strides = [1, 1]} : vector<8x64xbf16> to vector<8x8xbf16>
    %39 = vector.shape_cast %38 : vector<8x8xbf16> to vector<1x1x8x8xbf16>
    %40 = vector.extract_strided_slice %17 {offsets = [0, 40], sizes = [8, 8], strides = [1, 1]} : vector<8x64xbf16> to vector<8x8xbf16>
    %41 = vector.shape_cast %40 : vector<8x8xbf16> to vector<1x1x8x8xbf16>
    %42 = vector.extract_strided_slice %17 {offsets = [0, 48], sizes = [8, 8], strides = [1, 1]} : vector<8x64xbf16> to vector<8x8xbf16>
    %43 = vector.shape_cast %42 : vector<8x8xbf16> to vector<1x1x8x8xbf16>
    %44 = vector.extract_strided_slice %17 {offsets = [0, 56], sizes = [8, 8], strides = [1, 1]} : vector<8x64xbf16> to vector<8x8xbf16>
    %45 = vector.shape_cast %44 : vector<8x8xbf16> to vector<1x1x8x8xbf16>
    %46 = tpu.concatenate %39, %41, %43, %45 in 0 : vector<1x1x8x8xbf16>, vector<1x1x8x8xbf16>, vector<1x1x8x8xbf16>, vector<1x1x8x8xbf16> -> vector<4x1x8x8xbf16>
    %47 = vector.shape_cast %46 : vector<4x1x8x8xbf16> to vector<4x8x8xbf16>
    "tpu.trace_start"() <{level = 10 : i32, message = "bqd,bkd->bqk"}> : () -> ()
    %cst_14 = arith.constant dense<0.000000e+00> : vector<4x8x8xf32>
    %48 = tpu.matmul %27, %37, %cst_14 {dimension_numbers = #tpu.dot_dimension_numbers<[2], [2], [1], [1], [0, 0, 0, 1, 1, 1], [0], [0]>} : vector<4x8x8xbf16>, vector<4x8x8xbf16>, vector<4x8x8xf32> -> vector<4x8x8xf32>
    "tpu.trace_stop"() : () -> ()
    %cst_15 = arith.constant dense<0xFF800000> : vector<4x8xf32>
    %49 = vector.multi_reduction <maximumf>, %48, %cst_15 [2] : vector<4x8x8xf32> to vector<4x8xf32>
    %50 = vector.shape_cast %49 : vector<4x8xf32> to vector<4x8x1xf32>
    %51 = vector.broadcast %50 : vector<4x8x1xf32> to vector<4x8x8xf32>
    %52 = arith.subf %48, %51 : vector<4x8x8xf32>
    %53 = math.exp %52 : vector<4x8x8xf32>
    %cst_16 = arith.constant dense<0.000000e+00> : vector<4x8xf32>
    %54 = vector.multi_reduction <add>, %53, %cst_16 [2] : vector<4x8x8xf32> to vector<4x8xf32>
    %55 = vector.shape_cast %54 : vector<4x8xf32> to vector<4x8x1xf32>
    %56 = arith.truncf %53 : vector<4x8x8xf32> to vector<4x8x8xbf16>
    "tpu.trace_start"() <{level = 10 : i32, message = "bqk,bkd->bqd"}> : () -> ()
    %cst_17 = arith.constant dense<0.000000e+00> : vector<4x8x8xf32>
    %57 = tpu.matmul %56, %47, %cst_17 {dimension_numbers = #tpu.dot_dimension_numbers<[2], [1], [1], [2], [0, 0, 0, 1, 1, 2], [0], [0]>} : vector<4x8x8xbf16>, vector<4x8x8xbf16>, vector<4x8x8xf32> -> vector<4x8x8xf32>
    "tpu.trace_stop"() : () -> ()
    %58 = tpu.reciprocal %55 {approx = true} : vector<4x8x1xf32> -> vector<4x8x1xf32>
    %59 = vector.broadcast %58 : vector<4x8x1xf32> to vector<4x8x8xf32>
    %60 = arith.mulf %57, %59 : vector<4x8x8xf32>
    %61 = vector.shape_cast %60 : vector<4x8x8xf32> to vector<4x1x8x8xf32>
    %62 = vector.extract_strided_slice %61 {offsets = [0, 0, 0, 0], sizes = [1, 1, 8, 8], strides = [1, 1, 1, 1]} : vector<4x1x8x8xf32> to vector<1x1x8x8xf32>
    %63 = vector.shape_cast %62 : vector<1x1x8x8xf32> to vector<1x8x8xf32>
    %64 = vector.shape_cast %63 : vector<1x8x8xf32> to vector<8x8xf32>
    %65 = vector.extract_strided_slice %61 {offsets = [1, 0, 0, 0], sizes = [1, 1, 8, 8], strides = [1, 1, 1, 1]} : vector<4x1x8x8xf32> to vector<1x1x8x8xf32>
    %66 = vector.shape_cast %65 : vector<1x1x8x8xf32> to vector<1x8x8xf32>
    %67 = vector.shape_cast %66 : vector<1x8x8xf32> to vector<8x8xf32>
    %68 = vector.extract_strided_slice %61 {offsets = [2, 0, 0, 0], sizes = [1, 1, 8, 8], strides = [1, 1, 1, 1]} : vector<4x1x8x8xf32> to vector<1x1x8x8xf32>
    %69 = vector.shape_cast %68 : vector<1x1x8x8xf32> to vector<1x8x8xf32>
    %70 = vector.shape_cast %69 : vector<1x8x8xf32> to vector<8x8xf32>
    %71 = vector.extract_strided_slice %61 {offsets = [3, 0, 0, 0], sizes = [1, 1, 8, 8], strides = [1, 1, 1, 1]} : vector<4x1x8x8xf32> to vector<1x1x8x8xf32>
    %72 = vector.shape_cast %71 : vector<1x1x8x8xf32> to vector<1x8x8xf32>
    %73 = vector.shape_cast %72 : vector<1x8x8xf32> to vector<8x8xf32>
    %74 = tpu.concatenate %64, %67, %70, %73 in 1 : vector<8x8xf32>, vector<8x8xf32>, vector<8x8xf32>, vector<8x8xf32> -> vector<8x32xf32>
    %75 = arith.addf %10, %74 : vector<8x32xf32>
    %76 = arith.truncf %75 : vector<8x32xf32> to vector<8x32xbf16>
    %c0_18 = arith.constant 0 : index
    %c0_19 = arith.constant 0 : index
    %77 = vector.load %arg7[%c0_18, %c0_19] : memref<32x32xbf16, #tpu.memory_space<vmem>>, vector<32x32xbf16>
    %cst_20 = arith.constant dense<0.000000e+00> : vector<8x32xf32>
    %78 = tpu.matmul %76, %77, %cst_20 {dimension_numbers = #tpu.dot_dimension_numbers<[1], [0], [0], [1], [0, 0, 1, 1], [], []>} : vector<8x32xbf16>, vector<32x32xbf16>, vector<8x32xf32> -> vector<8x32xf32>
    %c0_21 = arith.constant 0 : index
    %c0_22 = arith.constant 0 : index
    %79 = vector.load %arg8[%c0_21, %c0_22] : memref<1x32xf32, #tpu.memory_space<vmem>>, vector<1x32xf32>
    %80 = vector.broadcast %79 : vector<1x32xf32> to vector<8x32xf32>
    %81 = arith.addf %78, %80 : vector<8x32xf32>
    %cst_23 = arith.constant 0.000000e+00 : f32
    %82 = vector.broadcast %cst_23 : f32 to vector<8x32xf32>
    %83 = arith.maximumf %81, %82 : vector<8x32xf32>
    %84 = arith.addf %75, %83 : vector<8x32xf32>
    %85 = vector.shape_cast %84 : vector<8x32xf32> to vector<1x8x32xf32>
    %c0_24 = arith.constant 0 : index
    %c0_25 = arith.constant 0 : index
    %c0_26 = arith.constant 0 : index
    %86 = vector.load %arg9[%c0_24, %c0_25, %c0_26] : memref<1x8x32xf32, #tpu.memory_space<vmem>>, vector<1x8x32xf32>
    tpu.vector_store %arg9[%c0_24, %c0_25, %c0_26], %85 {strides = array<i32>} : memref<1x8x32xf32, #tpu.memory_space<vmem>>, vector<1x8x32xf32>,
    return
  }
  func.func @transform_0(%arg0: i32) -> (i32, i32, i32) {
    %c0_i32 = arith.constant 0 : i32
    %c0_i32_0 = arith.constant 0 : i32
    %c0_i32_1 = arith.constant 0 : i32
    return %arg0, %c0_i32, %c0_i32_0 : i32, i32, i32
  }
  func.func @transform_1(%arg0: i32) -> (i32, i32, i32) {
    %c0_i32 = arith.constant 0 : i32
    %c0_i32_0 = arith.constant 0 : i32
    %c0_i32_1 = arith.constant 0 : i32
    return %arg0, %c0_i32, %c0_i32_0 : i32, i32, i32
  }
  func.func @transform_2(%arg0: i32) -> (i32, i32) {
    %c0_i32 = arith.constant 0 : i32
    %c0_i32_0 = arith.constant 0 : i32
    %c0_i32_1 = arith.constant 0 : i32
    return %c0_i32, %c0_i32_0 : i32, i32
  }
  func.func @transform_3(%arg0: i32) -> (i32, i32) {
    %c0_i32 = arith.constant 0 : i32
    %c0_i32_0 = arith.constant 0 : i32
    %c0_i32_1 = arith.constant 0 : i32
    return %c0_i32, %c0_i32_0 : i32, i32
  }
  func.func @transform_4(%arg0: i32) -> (i32, i32) {
    %c0_i32 = arith.constant 0 : i32
    %c0_i32_0 = arith.constant 0 : i32
    %c0_i32_1 = arith.constant 0 : i32
    return %c0_i32, %c0_i32_0 : i32, i32
  }
  func.func @transform_5(%arg0: i32) -> (i32, i32) {
    %c0_i32 = arith.constant 0 : i32
    %c0_i32_0 = arith.constant 0 : i32
    %c0_i32_1 = arith.constant 0 : i32
    return %c0_i32, %c0_i32_0 : i32, i32
  }
  func.func @transform_6(%arg0: i32) -> (i32, i32) {
    %c0_i32 = arith.constant 0 : i32
    %c0_i32_0 = arith.constant 0 : i32
    %c0_i32_1 = arith.constant 0 : i32
    return %c0_i32, %c0_i32_0 : i32, i32
  }
  func.func @transform_7(%arg0: i32) -> (i32, i32) {
    %c0_i32 = arith.constant 0 : i32
    %c0_i32_0 = arith.constant 0 : i32
    %c0_i32_1 = arith.constant 0 : i32
    return %c0_i32, %c0_i32_0 : i32, i32
  }
  func.func @transform_8(%arg0: i32) -> (i32, i32, i32) {
    %c0_i32 = arith.constant 0 : i32
    %c0_i32_0 = arith.constant 0 : i32
    %c0_i32_1 = arith.constant 0 : i32
    return %arg0, %c0_i32, %c0_i32_0 : i32, i32, i32
  }
}

</mosaic_0001>

<bundles_post_ra>
// kernel: tpu_custom_call.1
= control target key start
LH: loop header
LB: loop body
LE: loop exit
PB: predicated region body
PF: predicated region fallthrough
CT: control target
= control target key end

     0   :  { %s2042_s0 = inlined_call_operand.hbm [shape: f32[2,8,32], index: 0, kind: input, shape index: {}]   ;;  %s2043_s1 = inlined_call_operand.hbm [shape: f32[2,8,32], index: 1, kind: input, shape index: {}]   ;;  %s2044_s2 = inlined_call_operand.hbm [shape: bf16[32,32], index: 2, kind: input, shape index: {}]   ;;  %s2045_s3 = inlined_call_operand.vmem [shape: f32[1,32], index: 3, kind: input, shape index: {}]   ;;  %s2046_s4 = inlined_call_operand.hbm [shape: bf16[32,64], index: 4, kind: input, shape index: {}]   ;;  %s2047_s5 = inlined_call_operand.vmem [shape: f32[1,64], index: 5, kind: input, shape index: {}]   ;;  %s2048_s6 = inlined_call_operand.vmem [shape: bf16[32,32], index: 6, kind: input, shape index: {}]   ;;  %s2049_s7 = inlined_call_operand.vmem [shape: f32[1,32], index: 7, kind: input, shape index: {}]   ;;  %s2050_s8 = inlined_call_operand.hbm [shape: f32[2,8,32], index: 8, kind: output, shape index: {}]  }
   0x1   :  { %2058 = sst [smem:[#allocation19_spill]] %s2044_s2 }
   0x2   :  { %2059 = sst [smem:[#allocation20_spill]] %s2046_s4 }
   0x3   :  { %13 = vsyncpa [#allocation3], 0 }
   0x4   :  { %15 = vsyncpa [#allocation3 + $0x1], 0 }
   0x5   :  { %16 = vsyncpa [#allocation6], 0 }
   0x6   :  { %18 = vsyncpa [#allocation6 + $0x1], 0 }
   0x7   :  { %19 = vsyncpa [#allocation9], 0 }
   0x8   :  { %20 = vsyncpa [#allocation4], 0 }
   0x9   :  { %22 = vsyncpa [#allocation4 + $0x1], 0  ;;  %s1679_s27 = smov 0   ;;  %s1681_s28 = smov 0  }
   0xa   :  { %s1683_s29 = smov 0   ;;  %s1685_s30 = smov 0  }
   0xb LB: > { %2060 = sst [smem:[#allocation16_spill]] %s1612_s29  ;;  %s1700_s9 = sadd.s32 4294967295, %s1616_s30   ;;  %s1616_s30 = sphi %s1685_s30, %s2081_s30   ;;  %s1612_s29 = sphi %s1683_s29, %s2086_s29   ;;  %s1608_s28 = sphi %s1681_s28, %s2085_s28   ;;  %s1604_s27 = sphi %s1679_s27, %s2084_s27  }
   0xc   : > { %s1181_s10 = sadd.s32 4294967294, %s1616_s30   ;;  %p48_p0 = scmp.ne.s32.totalorder %s1608_s28, %s1604_s27 }
   0xd   : > { %p2051_p1 = scmp.eq.s32.totalorder %s1700_s9, 0  ;;  %p230_p3 = scmp.eq.s32.totalorder %s1181_s10, 1 }
   0xe   : > { %p1182_p5 = scmp.ge.s32.totalorder %s1616_s30, 1  ;;  %p237_p7 = scmp.lt.s32.totalorder %s1616_s30, 3 }
   0xf   : > { %p1709_p4 = por %p2051_p1, %p48_p0  ;;  %p1714_p6 = por %p230_p3, %p48_p0 }
  0x10   : > { %p1719_p8 = pnand %p1182_p5, %p237_p7  ;;  %s1618_s14 = smov [#allocation7]  }
  0x11   : > { %s2061_s11 = scalar_select %p1709_p4, 1, 0 }
  0x12   : > { %s2062_s12 = scalar_select %p1714_p6, 1, 0 }
  0x13   : > { %s2063_s13 = scalar_select %p1719_p8, 1, 0 }
  0x14   : > { %s249_s15 = sshll.u32 %s1618_s14, 4  ;;  %p1331_p9 = pneg %p1719_p8  ;;  %s1723_s15 = int_to_ptr.vmem [resolvable:$true] %s249_s15 }
  0x15   : > { %s1619_s17 = smov [#allocation8]   ;;  %s2065_s2 = sld [smem:[#allocation19_spill]] }
  0x16   : > { %p1730_p11 = pnand %p1331_p9, %p2051_p1  ;;  %s265_s18 = sshll.u32 %s1619_s17, 4  ;;  %s1734_s18 = int_to_ptr.vmem [resolvable:$true] %s265_s18 }
  0x18   : > { %p1424_p13 = pneg %p1730_p11 }
  0x1b   : > { %s1422_s21 = scalar_lea.hbm %s2065_s2, 256 }
  0x1c   : > { %p1423_p12 = scmp.ne.s32.totalorder %s2065_s2, %s1422_s21  ;;  %p1429_p5 = scmp.lt.u32.totalorder %s1422_s21, %s2065_s2 }
  0x1e   : > { %p1425_p0 = pnand %p1424_p13, %p1423_p12 }
  0x20   : > { %p1426_p3 = pneg %p1425_p0 }
  0x22   : > { %p1431_p7 = pnand %p1429_p5, %p1426_p3 }
  0x24   : > { %1434 = shalt.err (!%p1431_p7)
}
  0x25   : > { %s1435_s26 = scalar_lea.vmem %s1723_s15, 256  ;;  %p1443_p2 = scmp.lt.s32.totalorder %s1723_s15, %s1723_s15 }
  0x26   : > { %p1436_p9 = scmp.ne.s32.totalorder %s1723_s15, %s1435_s26  ;;  %p1444_p12 = scmp.lt.s32.totalorder %s1435_s26, %s1435_s26 }
  0x28   : > { %p1438_p10 = pnand %p1436_p9, %p1424_p13  ;;  %p1445_p0 = por %p1444_p12, %p1443_p2 }
  0x2a   : > { %p1439_p1 = pneg %p1438_p10 }
  0x2c   : > { %p1446_p6 = pnand %p1445_p0, %p1439_p1 }
  0x2e   : > { %1449 = shalt.err (!%p1446_p6)
}
  0x2f   : > { %s1620_s10 = smov 64   ;;  %s1621_s14 = smov 4  }
  0x30   : > { %1334 = dma.hbm_to_vmem [thread:$0]  (!%p1730_p11), %s2065_s2, 256, %s1723_s15, [#allocation6], %s1620_s10, %s1620_s10, %s1621_s14  }
  0x31   : > { %s2066_s4 = sld [smem:[#allocation20_spill]] }
  0x37   : > { %s1450_s22 = scalar_lea.hbm %s2066_s4, 256 }
  0x38   : > { %p1451_p2 = scmp.ne.s32.totalorder %s2066_s4, %s1450_s22  ;;  %p1457_p10 = scmp.lt.u32.totalorder %s1450_s22, %s2066_s4 }
  0x3a   : > { %p1453_p1 = pnand %p1451_p2, %p1424_p13 }
  0x3c   : > { %p1454_p6 = pneg %p1453_p1 }
  0x3e   : > { %p1459_p3 = pnand %p1457_p10, %p1454_p6 }
  0x40   : > { %1462 = shalt.err (!%p1459_p3)
}
  0x41   : > { %s1463_s15 = scalar_lea.vmem %s1734_s18, 256  ;;  %p1471_p12 = scmp.lt.s32.totalorder %s1734_s18, %s1734_s18 }
  0x42   : > { %p1464_p5 = scmp.ne.s32.totalorder %s1734_s18, %s1463_s15  ;;  %p1472_p0 = scmp.lt.s32.totalorder %s1463_s15, %s1463_s15 }
  0x44   : > { %p1466_p7 = pnand %p1464_p5, %p1424_p13  ;;  %p1473_p2 = por %p1472_p0, %p1471_p12 }
  0x46   : > { %p1467_p9 = pneg %p1466_p7 }
  0x48   : > { %p1474_p1 = pnand %p1473_p2, %p1467_p9 }
  0x4a   : > { %1477 = shalt.err (!%p1474_p1)
}
  0x4b   : > { %1337 = dma.hbm_to_vmem [thread:$0]  (!%p1730_p11), %s2066_s4, 256, %s1734_s18, [#allocation9], %s1620_s10, %s1620_s10, %s1621_s14  }
  0x4c   : > { %s1789_s20 = sadd.s32 1, %s1616_s30   ;;  %s35_s16 = sadd.s32 1, %s1612_s29 }
  0x4d   : > { %2067 = sst [smem:[#allocation17_spill]] %s1789_s20  ;;  %s32_s21 = ssub.s32 %s1616_s30, %s1789_s20 }
  0x4e   : > { %p42_p13 = scmp.ne.s32.totalorder %s1612_s29, %s1608_s28  ;;  %p33_p6 = scmp.eq.s32.totalorder %s32_s21, 0 }
  0x4f   : > { %p43_p10 = scmp.eq.s32.totalorder %s1616_s30, 0  ;;  %p2068_p3 = scmp.eq.s32.totalorder %s1700_s9, 1 }
  0x50   : > { %p1351_p7 = scmp.lt.s32.totalorder %s1616_s30, 2  ;;  %s288_s24 = sand.u32 1, %s1612_s29  }
  0x51   : > { %p1799_p5 = por %p2068_p3, %p42_p13  ;;  %p44_p9 = por %p43_p10, %p42_p13 }
  0x52   : > { %s1805_s23 = scalar_select %p33_p6, %s1612_s29, %s35_s16  }
  0x53   : > { %s2069_s22 = scalar_select %p1799_p5, 1, 0 }
  0x54   : > { %2070 = sst [smem:[#allocation18_spill]] %s1805_s23  ;;  %s1808_s18 = sshll.u32 %s288_s24, 3 }
  0x55   : > { %s1187_s10 = sshll.u32 %s1616_s30, 7  ;;  %s292_s15 = scalar_lea.vmem [#allocation2], %s1808_s18 }
  0x56   : > { %s1814_s26 = scalar_lea.hbm %s2042_s0, %s1187_s10  ;;  %s299_s17 = sshll.u32 %s292_s15, 4  ;;  %s1817_s17 = int_to_ptr.vmem [resolvable:$true] %s299_s17 }
  0x57   : > { %p1819_p11 = pnand %p1351_p7, %p44_p9  ;;  %s1826_s14 = scalar_lea.hbm %s2043_s1, %s1187_s10 }
  0x58   : > { %s306_s25 = sand.u32 1, %s1616_s30   ;;  %s289_s2 = scalar_lea.sflag [#allocation3], %s288_s24 }
  0x59   : > { %s1478_s4 = scalar_lea.hbm %s1814_s26, 128  ;;  %p1480_p0 = pneg %p1819_p11 }
  0x5a   : > { %p1479_p12 = scmp.ne.s32.totalorder %s1814_s26, %s1478_s4  ;;  %s1483_s29 = scalar_lea.hbm %s2042_s0, 256 }
  0x5b   : > { %p1484_p13 = scmp.lt.u32.totalorder %s1814_s26, %s2042_s0  ;;  %p1485_p6 = scmp.lt.u32.totalorder %s1483_s29, %s1478_s4 }
  0x5c   : > { %p1481_p2 = pnand %p1480_p0, %p1479_p12  ;;  %p1487_p3 = scmp.lt.u32.totalorder %s1478_s4, %s1814_s26 }
  0x5d   : > { %p1486_p10 = por %p1485_p6, %p1484_p13 }
  0x5e   : > { %p1482_p1 = pneg %p1481_p2 }
  0x5f   : > { %p1488_p7 = por %p1487_p3, %p1486_p10 }
  0x61   : > { %p1489_p9 = pnand %p1488_p7, %p1482_p1 }
  0x63   : > { %1492 = shalt.err (!%p1489_p9)
}
  0x64   : > { %s1493_s24 = scalar_lea.vmem %s1817_s17, 128  ;;  %s1622_s23 = smov [#allocation2]  }
  0x65   : > { %p1494_p12 = scmp.ne.s32.totalorder %s1817_s17, %s1493_s24  ;;  %s1498_s10 = sshll.u32 %s1622_s23, 4  ;;  %s1499_s10 = int_to_ptr.vmem [resolvable:$false] %s1498_s10 }
  0x66   : > { %s1500_s20 = scalar_lea.vmem %s1499_s10, 256  ;;  %p1501_p4 = scmp.lt.s32.totalorder %s1817_s17, %s1499_s10 }
  0x67   : > { %p1496_p2 = pnand %p1494_p12, %p1480_p0  ;;  %p1502_p13 = scmp.lt.s32.totalorder %s1500_s20, %s1493_s24 }
  0x69   : > { %p1497_p5 = pneg %p1496_p2  ;;  %p1503_p6 = por %p1502_p13, %p1501_p4 }
  0x6b   : > { %p1504_p10 = pnand %p1503_p6, %p1497_p5 }
  0x6d   : > { %1507 = shalt.err (!%p1504_p10)
}
  0x6e   : > { %1341 = dma.hbm_to_vmem [thread:$0]  (!%p1819_p11), %s1814_s26, 128, %s1817_s17, %s289_s2  }
  0x6f   : > { %s310_s4 = scalar_lea.vmem [#allocation5], %s1808_s18  ;;  %s307_s21 = scalar_lea.sflag [#allocation6], %s306_s25 }
  0x70   : > { %s317_s29 = sshll.u32 %s310_s4, 4  ;;  %s1508_s15 = scalar_lea.hbm %s1826_s14, 128  ;;  %s318_s29 = int_to_ptr.vmem [resolvable:$true] %s317_s29 }
  0x71   : > { %p1509_p4 = scmp.ne.s32.totalorder %s1826_s14, %s1508_s15  ;;  %s1513_s23 = scalar_lea.hbm %s2043_s1, 256 }
  0x72   : > { %p1514_p3 = scmp.lt.u32.totalorder %s1826_s14, %s2043_s1  ;;  %p1515_p7 = scmp.lt.u32.totalorder %s1513_s23, %s1508_s15 }
  0x73   : > { %p1511_p5 = pnand %p1509_p4, %p1480_p0  ;;  %p1517_p12 = scmp.lt.u32.totalorder %s1508_s15, %s1826_s14 }
  0x74   : > { %p1516_p9 = por %p1515_p7, %p1514_p3 }
  0x75   : > { %p1512_p1 = pneg %p1511_p5 }
  0x76   : > { %p1518_p2 = por %p1517_p12, %p1516_p9 }
  0x78   : > { %p1519_p13 = pnand %p1518_p2, %p1512_p1 }
  0x7a   : > { %1522 = shalt.err (!%p1519_p13)
}
  0x7b   : > { %s1523_s2 = scalar_lea.vmem %s318_s29, 128  ;;  %s1623_s18 = smov [#allocation5]  }
  0x7c   : > { %p1524_p6 = scmp.ne.s32.totalorder %s318_s29, %s1523_s2  ;;  %s1528_s26 = sshll.u32 %s1623_s18, 4  ;;  %s1529_s26 = int_to_ptr.vmem [resolvable:$false] %s1528_s26 }
  0x7d   : > { %s1530_s17 = scalar_lea.vmem %s1529_s26, 256  ;;  %p1531_p5 = scmp.lt.s32.totalorder %s318_s29, %s1529_s26 }
  0x7e   : > { %p1526_p10 = pnand %p1524_p6, %p1480_p0  ;;  %p1532_p8 = scmp.lt.s32.totalorder %s1530_s17, %s1523_s2 }
  0x80   : > { %p1527_p4 = pneg %p1526_p10  ;;  %p1533_p3 = por %p1532_p8, %p1531_p5 }
  0x82   : > { %p1534_p7 = pnand %p1533_p3, %p1527_p4 }
  0x84   : > { %1537 = shalt.err (!%p1534_p7)
}
  0x85   : > { %1344 = dma.hbm_to_vmem [thread:$0]  (!%p1819_p11), %s1826_s14, 128, %s318_s29, %s307_s21  }
  0x86   : > { %p2072_p1 = scmp.ne.s32.totalorder %s2063_s13, 0 }
  0x87   : > { %s1879_s25 = sand.u32 (!%p2072_p1), 1, %s1608_s28   ;;  %p2073_p8 = scmp.ne.s32.totalorder (!%p2072_p1), %s2061_s11, 0 }
  0x88   : > { %326 = sbr.rel (%p2072_p1) target bundleno = 1449 (0x5a9), region = 52  ;;  %s1882_s4 = sshll.u32 (!%p2072_p1), %s1879_s25, 3 }
  0x89   : > { %s329_s15 = scalar_lea.sflag (!%p2072_p1), [#allocation3], %s1879_s25  ;;  %s332_s16 = scalar_lea.vmem (!%p2072_p1), [#allocation2], %s1882_s4 }
  0x8f   : > { %1583 = dma.done.wait (%p2073_p8), %s329_s15, 128  }
  0x90   : > { %1585 = vsyncadd (%p2073_p8), %s329_s15, 4294967168  ;;  %s337_s13 = sand.u32 1, %s1700_s9   ;;  %s341_s14 = scalar_lea.vmem [#allocation5], %s1882_s4 }
  0x91   : > { %s338_s19 = scalar_lea.sflag [#allocation6], %s337_s13 }
  0x92   : > { %1587 = dma.done.wait (%p2073_p8), %s338_s19, 128  }
  0x93   : > { %1589 = vsyncadd (%p2073_p8), %s338_s19, 4294967168  ;;  %p2074_p11 = scmp.eq.s32.totalorder %s1700_s9, 0 }
  0x95   : > { %1591 = dma.done.wait (%p2074_p11), [#allocation6], 256   ;;  %p2075_p0 = pmov %p2074_p11 }
  0x97   : > { %1593 = vsyncadd (%p2075_p0), [#allocation6], 4294967040  ;;  %p2076_p9 = pmov %p2075_p0 }
  0x98   : > { %p2077_p12 = pmov %p2075_p0 }
  0x99   : > { %1595 = dma.done.wait (%p2076_p9), [#allocation9], 256  }
  0x9a   : > { %1597 = vsyncadd (%p2077_p12), [#allocation9], 4294967040  ;;  %v1624_v0 = vmov 0.0   ;;  %vm1625_vm0 = vmmov 0   ;;  %v1400_v1 = vld [vmem:[#allocation7] sm:$0xff]   ;;  %v1401_v2 = vld [vmem:[#allocation8] sm:$0xff]  }
  0x9b   : > { %1245 = vmatprep.subr.bf16.mxu0 %v1624_v0  ;;  %1253 = vmatprep.subr.bf16.mxu1 %v1624_v0  ;;  %v1402_v3 = vld [vmem:[#allocation7 + $0x8] sm:$0xff]   ;;  %v1403_v4 = vld [vmem:[#allocation8 + $0x8] sm:$0xff]   ;;  %vm415_vm1 = vcmask 261120   ;;  %v1196_v9 = vld [vmem:[%s2045_s3] ss:$0 sm:$0xff]  ;;  %vm541_vm2 = vcmask 64512  }
  0x9c   : > { %1249 = vmatprep.mubr.msk.bf16.mxu0 %vm1625_vm0, %v1624_v0  ;;  %1257 = vmatprep.mubr.msk.bf16.mxu1 %vm1625_vm0, %v1624_v0  ;;  %v388_v5 = vld [vmem:[%s332_s16] sm:$0xff]  ;;  %v390_v6 = vld [vmem:[%s341_s14] sm:$0xff]  ;;  %s1626_s23 = smov 120   ;;  %s1627_s10 = smov 104   ;;  %vm771_vm3 = vcmask 1043456   ;;  %vm980_vm4 = vcmask 130048  }
  0x9d   : > { %1246 = vmatpush3.bf16.msra.mxu0 %v1400_v1  ;;  %1254 = vmatpush3.bf16.msra.mxu1 %v1401_v2  ;;  %v389_v7 = vpack.c.bf16 %v388_v5, %v388_v5  ;;  %v391_v8 = vpack.c.bf16 %v390_v6, %v390_v6  ;;  %v1200_v10 = vld [vmem:[%s2047_s5] ss:$0 sm:$0xff]  ;;  %s1628_s20 = smov 112   ;;  %s1629_s2 = smov 96   ;;  %vm982_vm5 = vcmask 195584  }
  0x9e   : > { %1247 = vmatprep.subr.bf16.mxu0 %v1624_v0  ;;  %1255 = vmatprep.subr.bf16.mxu1 %v1624_v0  ;;  %s1630_s16 = smov 8   ;;  %s1631_s13 = smov 16  }
  0x9f   : > { %s1632_s19 = smov 24   ;;  %s1217_s29 = sshll.u32 %s1700_s9, 7 }
  0xa0   : > { %s386_s21 = scalar_lea.vmem [#allocation10], %s1882_s4  ;;  %p2078_p13 = scmp.ne.s32.totalorder %s2069_s22, 0 }
  0xa1   : > { %1248 = vmatpush3.bf16.msra.mxu0 %v1402_v3  ;;  %1256 = vmatpush3.bf16.msra.mxu1 %v1403_v4  ;;  %s1069_s24 = sshll.u32 %s386_s21, 4  ;;  %s1633_s9 = smov [#allocation10]   ;;  %s1999_s24 = int_to_ptr.vmem [resolvable:$true] %s1069_s24 }
  0xa2   : > { %1261 = vmatprep.subr.bf16.mxu0 %v1624_v0  ;;  %1267 = vmatprep.subr.bf16.mxu1 %v1624_v0  ;;  %s1538_s18 = scalar_lea.vmem %s1999_s24, 128  ;;  %s1542_s4 = sshll.u32 %s1633_s9, 4  ;;  %s1543_s4 = int_to_ptr.vmem [resolvable:$false] %s1542_s4 }
  0xa3   : > { %p1539_p2 = scmp.ne.s32.totalorder %s1999_s24, %s1538_s18  ;;  %s1544_s26 = scalar_lea.vmem %s1543_s4, 256 }
  0xa4   : > { %1250 = vmatmul.mubr.msk.bf16.vlgmr.msra.gmra.mrb[0].mxu0 %vm415_vm1, %v389_v7  ;;  %1258 = vmatmul.mubr.msk.bf16.vlgmr.msra.gmra.mrb[0].mxu1 %vm415_vm1, %v391_v8  ;;  %p1545_p4 = scmp.lt.s32.totalorder %s1999_s24, %s1543_s4  ;;  %p1546_p5 = scmp.lt.s32.totalorder %s1544_s26, %s1538_s18 }
  0xa5   : > { %1263 = vmatprep.mubr.msk.bf16.mxu0 %vm1625_vm0, %v1624_v0  ;;  %1269 = vmatprep.mubr.msk.bf16.mxu1 %vm1625_vm0, %v1624_v0  ;;  %p1540_p6 = pnand %p1539_p2, %p2078_p13 }
  0xa6   : > { %p1547_p3 = por %p1546_p5, %p1545_p4 }
  0xa7   : > { %p1541_p10 = pneg %p1540_p6 }
  0xa9   : > { %p1548_p7 = pnand %p1547_p3, %p1541_p10 }
 0x177   : > { %v453_v11 = vpop.f32.mrb[0].mxu0  ;;  %v519_v13 = vpop.f32.mrb[0].mxu1 }
 0x178   : > { %v1926_v12 = vadd.f32 %v1196_v9, %v453_v11  ;;  %v1251_v14 = vpop.f32.mrb[1].mxu0  ;;  %v520_v15 = vadd.f32 %v1200_v10, %v519_v13  ;;  %v1259_v16 = vpop.f32.mrb[1].mxu1 }
 0x179   : > { %v456_v17 = vpop.f32.mrb[2].mxu0  ;;  %v522_v19 = vpop.f32.mrb[2].mxu1 }
 0x17a   : > { %v525_v18 = vpack.c.bf16 %v1926_v12, %v1926_v12  ;;  %v1252_v20 = vpop.f32.mrb[3].mxu0  ;;  %v526_v21 = vpack.c.bf16 %v520_v15, %v520_v15  ;;  %v1260_v22 = vpop.f32.mrb[3].mxu1 }
 0x17c   : > { %528 = vrot.lane.b32.xlu1 %v525_v18, %s1626_s23  ;;  %535 = vrot.lane.b32.xlu0 %v526_v21, %s1626_s23  ;;  %v546_v23 = vsel %vm541_vm2, %v526_v21, 0 }
 0x17d   : > { %1262 = vmatpush3.bf16.xpose.msra.mxu0 %v546_v23 }
 0x17e   : > { %1273 = vmatprep.subr.bf16.mxu0 %v1624_v0 }
 0x180   : > { %539 = vrot.lane.b32.xlu1 %v526_v21, %s1627_s10  ;;  %537 = vrot.lane.b32.xlu0 %v526_v21, %s1628_s20 }
 0x184   : > { %532 = vrot.lane.b32.xlu1 %v525_v18, %s1627_s10  ;;  %530 = vrot.lane.b32.xlu0 %v525_v18, %s1628_s20  ;;  %s1997_s20 = scalar_lea.hbm %s2050_s8, %s1217_s29 }
 0x185   : > { %1264 = vmatmul.mubr.msk.bf16.vlgmr.msra.gmra.mrb[4].mxu0 %vm541_vm2, %v525_v18 }
 0x186   : > { %1275 = vmatprep.mubr.msk.bf16.mxu0 %vm1625_vm0, %v1624_v0 }
 0x188   : > { %766 = vrot.lane.b32.xlu1 %v526_v21, %s1629_s2 }
 0x1ee   : > { %v529_v24 = vpop.permute.xlu1 %528  ;;  %v536_v25 = vpop.permute.xlu0 %535 }
 0x1ef   : > { %v592_v26 = vsel %vm541_vm2, %v536_v25, 0 }
 0x1f0   : > { %1268 = vmatpush3.bf16.xpose.msra.mxu1 %v592_v26 }
 0x1f1   : > { %1279 = vmatprep.subr.bf16.mxu1 %v1624_v0 }
 0x1f2   : > { %v540_v27 = vpop.permute.xlu1 %539  ;;  %v538_v28 = vpop.permute.xlu0 %537 }
 0x1f3   : > { %v638_v29 = vsel %vm541_vm2, %v538_v28, 0  ;;  %v684_v31 = vsel %vm541_vm2, %v540_v27, 0 }
 0x1f4   : > { %1274 = vmatpush3.bf16.xpose.msra.mxu0 %v638_v29  ;;  %v1404_v29 = vld [vmem:[%s2048_s6] sm:$0xff]  }
 0x1f5   : > { %1285 = vmatprep.subr.bf16.mxu0 %v1624_v0 }
 0x1f6   : > { %v533_v30 = vpop.permute.xlu1 %532  ;;  %v531_v33 = vpop.permute.xlu0 %530 }
 0x1f7   : > { %1270 = vmatmul.mubr.msk.bf16.vlgmr.msra.gmra.mrb[4].mxu1 %vm541_vm2, %v529_v24 }
 0x1f8   : > { %1280 = vmatpush3.bf16.xpose.msra.mxu1 %v684_v31  ;;  %1281 = vmatprep.mubr.msk.bf16.mxu1 %vm1625_vm0, %v1624_v0  ;;  %v1405_v31 = vld [vmem:[%s2048_s6 + $0x8] sm:$0xff]  }
 0x1f9   : > { %1291 = vmatprep.subr.bf16.mxu1 %v1624_v0 }
 0x1fa   : > { %v767_v32 = vpop.permute.xlu1 %766 }
 0x1fb   : > { %v773_v34 = vsel %vm771_vm3, %v767_v32, 0  ;;  %1276 = vmatmul.mubr.msk.bf16.vlgmr.msra.gmra.mrb[8].mxu0 %vm541_vm2, %v531_v33 }
 0x1fc   : > { %1286 = vmatpush3.bf16.msra.mxu0 %v773_v34  ;;  %1287 = vmatprep.mubr.msk.bf16.mxu0 %vm1625_vm0, %v1624_v0 }
 0x1fd   : > { %1297 = vmatprep.subr.bf16.mxu0 %v1624_v0 }
 0x1ff   : > { %1282 = vmatmul.mubr.msk.bf16.vlgmr.msra.gmra.mrb[8].mxu1 %vm541_vm2, %v533_v30 }
 0x200   : > { %1293 = vmatprep.mubr.msk.bf16.mxu1 %vm1625_vm0, %v1624_v0 }
 0x258   : > { %v582_v35 = vpop.f32.mrb[4].mxu0 }
 0x259   : > { %v1265_v36 = vpop.f32.mrb[5].mxu0  ;;  %v726_v37 = vsel %vm541_vm2, %v582_v35, -inf }
 0x25a   : > { %727 = vmax.xlane.f32.xlu0 %v726_v37  ;;  %v585_v38 = vpop.f32.mrb[6].mxu0 }
 0x25b   : > { %v1266_v39 = vpop.f32.mrb[7].mxu0 }
 0x2ca   : > { %v628_v40 = vpop.f32.mrb[4].mxu1 }
 0x2cb   : > { %v1271_v41 = vpop.f32.mrb[5].mxu1  ;;  %v729_v42 = vsel %vm541_vm2, %v628_v40, -inf }
 0x2cc   : > { %730 = vmax.xlane.f32.xlu1 %v729_v42  ;;  %v631_v43 = vpop.f32.mrb[6].mxu1 }
 0x2cd   : > { %v1272_v44 = vpop.f32.mrb[7].mxu1 }
 0x2ce   : > { %v674_v45 = vpop.f32.mrb[8].mxu0 }
 0x2cf   : > { %v1277_v46 = vpop.f32.mrb[9].mxu0  ;;  %v732_v47 = vsel %vm541_vm2, %v674_v45, -inf }
 0x2d0   : > { %733 = vmax.xlane.f32.xlu0 %v732_v47  ;;  %v677_v48 = vpop.f32.mrb[10].mxu0 }
 0x2d1   : > { %v1278_v49 = vpop.f32.mrb[11].mxu0 }
 0x2d2   : > { %v720_v50 = vpop.f32.mrb[8].mxu1 }
 0x2d3   : > { %v1283_v51 = vpop.f32.mrb[9].mxu1  ;;  %v735_v52 = vsel %vm541_vm2, %v720_v50, -inf }
 0x2d4   : > { %v723_v53 = vpop.f32.mrb[10].mxu1  ;;  %736 = vmax.xlane.f32.xlu0 %v735_v52 }
 0x2d5   : > { %v1284_v54 = vpop.f32.mrb[11].mxu1 }
 0x2dd   : > { %863 = vrot.lane.b32.xlu1 %v538_v28, %s1629_s2 }
 0x2e1   : > { %911 = vrot.lane.b32.xlu1 %v540_v27, %s1629_s2 }
 0x2e7   : > { %v728_v55 = vpop.xlane.xlu0 %727 }
 0x2e8   : > { %v738_v56 = vsub.f32 %v582_v35, %v728_v55 }
 0x2ea   : > { %v742_v57 = vmul.f32 1.442695, %v738_v56  ;;  %815 = vrot.lane.b32.xlu0 %v536_v25, %s1629_s2  ;;  %s1056_s2 = scalar_lea.sflag [#allocation4], %s1879_s25 }
 0x2ec   : > { %1406 = vpow2.f32 %v742_v57 }
 0x2f6   : > { %v1407_v58 = vpop.eup %1406 }
 0x2f7   : > { %v762_v59 = vpack.c.bf16 %v1407_v58, %v1407_v58  ;;  %v750_v22 = vsel %vm541_vm2, %v1407_v58, 0.0 }
 0x2f9   : > { %1288 = vmatmul.mubr.msk.bf16.vlgmr.msra.gmra.mrb[12].mxu0 %vm541_vm2, %v762_v59 }
 0x2fa   : > { %1299 = vmatprep.mubr.msk.bf16.mxu0 %vm1625_vm0, %v1624_v0 }
 0x359   : > { %v731_v60 = vpop.xlane.xlu1 %730 }
 0x35a   : > { %v739_v61 = vsub.f32 %v628_v40, %v731_v60  ;;  %v1212_v60 = vld [vmem:[%s2049_s7] ss:$0 sm:$0xff] }
 0x35c   : > { %v744_v62 = vmul.f32 1.442695, %v739_v61 }
 0x35d   : > { %v864_v63 = vpop.permute.xlu1 %863  ;;  %v734_v1 = vpop.xlane.xlu0 %733 }
 0x35e   : > { %1408 = vpow2.f32 %v744_v62  ;;  %v869_v2 = vsel %vm771_vm3, %v864_v63, 0  ;;  %v740_v3 = vsub.f32 %v674_v45, %v734_v1 }
 0x35f   : > { %1298 = vmatpush3.bf16.msra.mxu0 %v869_v2 }
 0x360   : > { %v746_v4 = vmul.f32 1.442695, %v740_v3  ;;  %1309 = vmatprep.subr.bf16.mxu0 %v1624_v0 }
 0x361   : > { %v737_v5 = vpop.xlane.xlu0 %736  ;;  %v912_v11 = vpop.permute.xlu1 %911 }
 0x362   : > { %1410 = vpow2.f32 %v746_v4  ;;  %v741_v6 = vsub.f32 %v720_v50, %v737_v5  ;;  %v917_v15 = vsel %vm771_vm3, %v912_v11, 0 }
 0x364   : > { %v748_v7 = vmul.f32 1.442695, %v741_v6 }
 0x365   : > { %v816_v8 = vpop.permute.xlu0 %815 }
 0x366   : > { %1412 = vpow2.f32 %v748_v7  ;;  %v821_v9 = vsel %vm771_vm3, %v816_v8, 0 }
 0x367   : > { %1292 = vmatpush3.bf16.msra.mxu1 %v821_v9 }
 0x368   : > { %v1409_v10 = vpop.eup %1408  ;;  %1303 = vmatprep.subr.bf16.mxu1 %v1624_v0 }
 0x369   : > { %v753_v13 = vsel %vm541_vm2, %v1409_v10, 0.0  ;;  %v763_v14 = vpack.c.bf16 %v1409_v10, %v1409_v10 }
 0x36a   : > { %754 = vadd.xlane.f32.xlu0 %v753_v13 }
 0x36b   : > { %1294 = vmatmul.mubr.msk.bf16.vlgmr.msra.gmra.mrb[12].mxu1 %vm541_vm2, %v763_v14 }
 0x36c   : > { %v1411_v16 = vpop.eup %1410  ;;  %1304 = vmatpush3.bf16.msra.mxu1 %v917_v15  ;;  %1305 = vmatprep.mubr.msk.bf16.mxu1 %vm1625_vm0, %v1624_v0 }
 0x36d   : > { %v756_v17 = vsel %vm541_vm2, %v1411_v16, 0.0  ;;  %v764_v18 = vpack.c.bf16 %v1411_v16, %v1411_v16 }
 0x36e   : > { %757 = vadd.xlane.f32.xlu1 %v756_v17 }
 0x36f   : > { %1300 = vmatmul.mubr.msk.bf16.vlgmr.msra.gmra.mrb[16].mxu0 %vm541_vm2, %v764_v18 }
 0x370   : > { %v1413_v19 = vpop.eup %1412  ;;  %1313 = vmatprep.mubr.msk.bf16.mxu0 %vm1625_vm0, %v1624_v0  ;;  %1310 = vmatpush3.bf16.msra.mxu0 %v1404_v29 }
 0x371   : > { %v759_v20 = vsel %vm541_vm2, %v1413_v19, 0.0  ;;  %v765_v21 = vpack.c.bf16 %v1413_v19, %v1413_v19  ;;  %1311 = vmatprep.subr.bf16.mxu0 %v1624_v0 }
 0x372   : > { %760 = vadd.xlane.f32.xlu0 %v759_v20 }
 0x373   : > { %1306 = vmatmul.mubr.msk.bf16.vlgmr.msra.gmra.mrb[16].mxu1 %vm541_vm2, %v765_v21 }
 0x374   : > { %1312 = vmatpush3.bf16.msra.mxu0 %v1405_v31 }
 0x376   : > { %751 = vadd.xlane.f32.xlu0 %v750_v22 }
 0x3cc   : > { %v809_v23 = vpop.f32.mrb[12].mxu0 }
 0x3cd   : > { %v1289_v24 = vpop.f32.mrb[13].mxu0 }
 0x3ce   : > { %v812_v25 = vpop.f32.mrb[14].mxu0 }
 0x3cf   : > { %v1290_v26 = vpop.f32.mrb[15].mxu0 }
 0x3f7   : > { %v755_v27 = vpop.xlane.xlu0 %754 }
 0x3f8   : > { %1414 = vrcp.f32 %v755_v27 }
 0x3fb   : > { %v758_v28 = vpop.xlane.xlu1 %757 }
 0x3fc   : > { %1416 = vrcp.f32 %v758_v28 }
 0x3ff   : > { %v761_v30 = vpop.xlane.xlu0 %760 }
 0x400   : > { %1418 = vrcp.f32 %v761_v30 }
 0x402   : > { %v1415_v32 = vpop.eup %1414 }
 0x403   : > { %v752_v49 = vpop.xlane.xlu0 %751 }
 0x404   : > { %1420 = vrcp.f32 %v752_v49 }
 0x406   : > { %v1417_v38 = vpop.eup %1416 }
 0x40a   : > { %v1419_v43 = vpop.eup %1418 }
 0x40e   : > { %v1421_v50 = vpop.eup %1420 }
 0x40f   : > { %v963_v52 = vmul.f32 %v1421_v50, %v809_v23 }
 0x43e   : > { %v857_v33 = vpop.f32.mrb[12].mxu1 }
 0x43f   : > { %v964_v34 = vmul.f32 %v1415_v32, %v857_v33  ;;  %v1295_v35 = vpop.f32.mrb[13].mxu1 }
 0x440   : > { %v860_v36 = vpop.f32.mrb[14].mxu1 }
 0x441   : > { %v1296_v37 = vpop.f32.mrb[15].mxu1  ;;  %968 = vrot.lane.b32.xlu1 %v964_v34, %s1630_s16 }
 0x442   : > { %v905_v39 = vpop.f32.mrb[16].mxu0 }
 0x443   : > { %v965_v40 = vmul.f32 %v1417_v38, %v905_v39  ;;  %v1301_v41 = vpop.f32.mrb[17].mxu0 }
 0x444   : > { %v908_v42 = vpop.f32.mrb[18].mxu0 }
 0x445   : > { %972 = vrot.lane.b32.xlu0 %v965_v40, %s1631_s13  ;;  %v1302_v0 = vpop.f32.mrb[19].mxu0 }
 0x446   : > { %v953_v44 = vpop.f32.mrb[16].mxu1 }
 0x447   : > { %v966_v45 = vmul.f32 %v1419_v43, %v953_v44  ;;  %v1307_v46 = vpop.f32.mrb[17].mxu1 }
 0x448   : > { %v956_v47 = vpop.f32.mrb[18].mxu1 }
 0x449   : > { %v1308_v48 = vpop.f32.mrb[19].mxu1  ;;  %976 = vrot.lane.b32.xlu1 %v966_v45, %s1632_s19 }
 0x4b3   : > { %v969_v51 = vpop.permute.xlu1 %968 }
 0x4b4   : > { %v979_v54 = vsel %vm541_vm2, %v963_v52, %v969_v51 }
 0x4b7   : > { %v973_v53 = vpop.permute.xlu0 %972 }
 0x4b8   : > { %v981_v55 = vsel %vm980_vm4, %v979_v54, %v973_v53 }
 0x4bb   : > { %v977_v56 = vpop.permute.xlu1 %976 }
 0x4bc   : > { %v983_v57 = vsel %vm982_vm5, %v981_v55, %v977_v56 }
 0x4bd   : > { %v984_v58 = vadd.f32 %v983_v57, %v1926_v12 }
 0x4bf   : > { %v985_v59 = vpack.c.bf16 %v984_v58, %v984_v58 }
 0x4c1   : > { %1314 = vmatmul.mubr.msk.bf16.vlgmr.msra.gmra.mrb[20].mxu0 %vm415_vm1, %v985_v59 }
 0x594   : > { %v1046_v61 = vpop.f32.mrb[20].mxu0 }
 0x595   : > { %v1047_v62 = vadd.f32 %v1212_v60, %v1046_v61  ;;  %v1315_v63 = vpop.f32.mrb[21].mxu0 }
 0x596   : > { %v1049_v1 = vpop.f32.mrb[22].mxu0 }
 0x597   : > { %v1052_v2 = vmax.f32 %v1047_v62, 0.0  ;;  %v1316_v3 = vpop.f32.mrb[23].mxu0 }
 0x599   : > { %v1053_v4 = vadd.f32 %v1052_v2, %v984_v58 }
 0x59b   : > { %1054 = vst.msk [vmem:[%s386_s21] sm:$0xff] %vm415_vm1, %v1053_v4 }
 0x59c   : > { %1551 = shalt.err (!%p1548_p7)
}
 0x59d   : > { %s1552_s25 = scalar_lea.hbm %s1997_s20, 128  ;;  %s1556_s16 = scalar_lea.hbm %s2050_s8, 256 }
 0x59e   : > { %p1553_p1 = scmp.ne.s32.totalorder %s1997_s20, %s1552_s25  ;;  %p1557_p0 = scmp.lt.u32.totalorder %s1997_s20, %s2050_s8 }
 0x59f   : > { %p1558_p9 = scmp.lt.u32.totalorder %s1556_s16, %s1552_s25  ;;  %p1560_p2 = scmp.lt.u32.totalorder %s1552_s25, %s1997_s20 }
 0x5a0   : > { %p1554_p8 = pnand %p1553_p1, %p2078_p13 }
 0x5a1   : > { %p1559_p12 = por %p1558_p9, %p1557_p0 }
 0x5a2   : > { %p1555_p11 = pneg %p1554_p8 }
 0x5a3   : > { %p1561_p6 = por %p1560_p2, %p1559_p12 }
 0x5a5   : > { %p1562_p10 = pnand %p1561_p6, %p1555_p11 }
 0x5a7   : > { %1565 = shalt.err (!%p1562_p10)
}
 0x5a8   : > { %1329 = dma.vmem_to_hbm [thread:$0]  (%p2078_p13), %s1999_s24, 128, %s1997_s20, %s1056_s2  }
 0x5a9 PF: > { %s1081_s14 = sand.u32 1, %s1604_s27   ;;  %p2079_p4 = scmp.ne.s32.totalorder %s2062_s12, 0 }
 0x5aa   : > { %p2080_p5 = scmp.ge.s32.totalorder %s1616_s30, 2  ;;  %s1082_s11 = scalar_lea.sflag [#allocation4], %s1081_s14 }
 0x5ac   : > { %p1346_p3 = pnand %p2080_p5, %p2079_p4 }
 0x5ae   : > { %1599 = dma.done.wait (!%p1346_p3), %s1082_s11, 128  }
 0x5af   : > { %1601 = vsyncadd (!%p1346_p3), %s1082_s11, 4294967168  ;;  %s2081_s30 = sld [smem:[#allocation17_spill]]  ;;  %s2082_s29 = sld [smem:[#allocation16_spill]] }
 0x5b0   : > { %s2083_s21 = sld [smem:[#allocation18_spill]]  ;;  %s2084_s27 = smov %s1608_s28 }
 0x5b5   : > { %p25_p7 = scmp.ge.s32.totalorder %s2081_s30, 4   ;;  %s2085_s28 = smov %s2082_s29 }
 0x5b6   : > { %s2086_s29 = smov %s2083_s21 }
 0x5b7   :  { %27 = sbr.rel (!%p25_p7) target bundleno = 11 (0xb), region = 118 }
 0x5be   :  { %1087 = vsyncpa [#allocation3], 1 }
 0x5bf   :  { %1089 = vsyncpa [#allocation3 + $0x1], 1 }
 0x5c0   :  { %1090 = vsyncpa [#allocation6], 1 }
 0x5c1   :  { %1092 = vsyncpa [#allocation6 + $0x1], 1 }
 0x5c2   :  { %1093 = vsyncpa [#allocation9], 1 }
 0x5c3   :  { %1094 = vsyncpa [#allocation4], 1 }
 0x5c4   :  { %1096 = vsyncpa [#allocation4 + $0x1], 1 }

</bundles_post_ra>
